<compile_context>
chip_gen: v7x
topology: tpu7x:2x2x1
jax: 0.10.0
libtpu: 0.0.40
codegen_flags: <defaults>
</compile_context>

<pallas_src>
import functools

import jax
import jax.numpy as jnp
from jax.experimental import pallas as pl
from jax.experimental.pallas import tpu as pltpu


def _round_up(x, m):
    return ((x + m - 1) // m) * m


def _generator_kernel(x_ref, w_ref, b_ref, o_ref, m_ref, s_ref):
    # x_ref: (tm, D)   w_ref: (D, tv)   b_ref: (1, tv)
    # o_ref: (tm, V_pad) -- resident across the vocab grid axis
    # m_ref / s_ref: (tm, 1) f32 running max / running sum-exp
    j = pl.program_id(1)
    nj = pl.num_programs(1)
    tv = w_ref.shape[1]

    @pl.when(j == 0)
    def _():
        m_ref[...] = jnp.full_like(m_ref, -jnp.inf)
        s_ref[...] = jnp.zeros_like(s_ref)

    # logits tile on the MXU with f32 accumulation
    logits = jnp.dot(x_ref[...], w_ref[...], preferred_element_type=jnp.float32)
    logits = logits + b_ref[...].astype(jnp.float32)

    # online (flash-style) max / sum-exp update
    m_prev = m_ref[...]
    m_new = jnp.maximum(m_prev, jnp.max(logits, axis=-1, keepdims=True))
    alpha = jnp.exp(m_prev - m_new)
    s_ref[...] = alpha * s_ref[...] + jnp.sum(
        jnp.exp(logits - m_new), axis=-1, keepdims=True
    )
    m_ref[...] = m_new

    # stash raw logits in the resident output block (lane-aligned slice)
    off = pl.multiple_of(j * tv, tv)
    o_ref[:, pl.ds(off, tv)] = logits.astype(o_ref.dtype)

    # last vocab step: normalize the whole row tile in place
    @pl.when(j == nj - 1)
    def _():
        lse = m_ref[...] + jnp.log(s_ref[...])
        o_ref[...] = (o_ref[...].astype(jnp.float32) - lse).astype(o_ref.dtype)


@functools.partial(jax.jit, static_argnames=("block_rows", "block_vocab"))
def generator_forward(x, w, b, *, block_rows=256, block_vocab=2048):
    """x: [B, S, d_model], w: [d_model, vocab], b: [vocab] -> log_softmax(x @ w + b)."""
    B, S, D = x.shape
    V = w.shape[1]
    M = B * S

    # effective tile sizes (sublane/lane aligned, no larger than the problem)
    tm = min(block_rows, _round_up(M, 8))
    tv = _round_up(min(block_vocab, _round_up(V, 128)), 128)

    M_pad = _round_up(M, tm)
    V_pad = _round_up(V, tv)

    x2 = x.reshape(M, D)
    b2 = b.reshape(1, V)
    if M_pad != M:
        x2 = jnp.pad(x2, ((0, M_pad - M), (0, 0)))
    if V_pad != V:
        w = jnp.pad(w, ((0, 0), (0, V_pad - V)))
        # padded vocab columns get a huge negative bias so exp() -> 0 and they
        # never affect the row max / sum-exp
        b2 = jnp.pad(b2, ((0, 0), (0, V_pad - V)), constant_values=-1e30)

    grid = (M_pad // tm, V_pad // tv)

    # VMEM budget: double-buffered x / weight / bias tiles, resident output
    # row block (double-buffered across row tiles), small scratch; ~50%
    # headroom, clamped to a sane physical range.
    xb = jnp.dtype(x2.dtype).itemsize
    wb = jnp.dtype(w.dtype).itemsize
    bb = jnp.dtype(b2.dtype).itemsize
    vmem_bytes = (
        2 * tm * D * xb          # x tile
        + 2 * D * tv * wb        # weight tile
        + 2 * tv * bb            # bias tile
        + 2 * tm * V_pad * xb    # resident output row block
        + 4 * tm * 128 * 4       # m / s scratch (lane-padded)
    )
    vmem_limit = int(
        min(120 * 1024 * 1024, max(32 * 1024 * 1024, int(vmem_bytes * 1.5)))
    )

    out2 = pl.pallas_call(
        _generator_kernel,
        out_shape=jax.ShapeDtypeStruct((M_pad, V_pad), x.dtype),
        grid_spec=pltpu.PrefetchScalarGridSpec(
            num_scalar_prefetch=0,
            grid=grid,
            in_specs=[
                pl.BlockSpec((tm, D), lambda i, j: (i, 0)),   # x row tile (resident over j)
                pl.BlockSpec((D, tv), lambda i, j: (0, j)),   # weight vocab tile
                pl.BlockSpec((1, tv), lambda i, j: (0, j)),   # bias vocab tile
            ],
            out_specs=pl.BlockSpec((tm, V_pad), lambda i, j: (i, 0)),
            scratch_shapes=[
                pltpu.VMEM((tm, 1), jnp.float32),   # running max
                pltpu.VMEM((tm, 1), jnp.float32),   # running sum-exp
            ],
        ),
        compiler_params=pltpu.CompilerParams(
            dimension_semantics=("parallel", "arbitrary"),
            vmem_limit_bytes=vmem_limit,
        ),
    )(x2, w, b2)

    return out2[:M, :V].reshape(B, S, V)


def init_generator_params(key, d_model, vocab, dtype=jnp.float32):
    """Deterministic init mimicking nn.Linear (uniform(-1/sqrt(d), 1/sqrt(d)))."""
    kw, kb = jax.random.split(key)
    bound = 1.0 / (d_model ** 0.5)
    # stored as [d_model, vocab] (transpose of PyTorch's [vocab, d_model])
    w = jax.random.uniform(kw, (d_model, vocab), dtype, minval=-bound, maxval=bound)
    b = jax.random.uniform(kb, (vocab,), dtype, minval=-bound, maxval=bound)
    return w, b


if __name__ == "__main__":
    key = jax.random.PRNGKey(0)
    kx, kp, kx2, kp2 = jax.random.split(key, 4)

    # main check: several vocab tiles exercise the online log-softmax path
    batch, seq, d_model, vocab = 2, 8, 32, 512
    x = jax.random.normal(kx, (batch, seq, d_model), jnp.float32)
    w, b = init_generator_params(kp, d_model, vocab)

    out = generator_forward(x, w, b, block_rows=16, block_vocab=128)
    out = jax.block_until_ready(out)

    ref = jax.nn.log_softmax(x @ w + b, axis=-1)
    assert out.shape == (batch, seq, vocab)
    assert jnp.allclose(out, ref, atol=1e-5, rtol=1e-5), "mismatch vs reference"
    assert jnp.allclose(jnp.sum(jnp.exp(out), axis=-1), 1.0, atol=1e-4)

    # second check: odd sizes exercise the row- and vocab-padding paths
    b2s, s2, v2 = 1, 5, 200
    x_b = jax.random.normal(kx2, (b2s, s2, d_model), jnp.float32)
    w_b, bias_b = init_generator_params(kp2, d_model, v2)
    out_b = jax.block_until_ready(
        generator_forward(x_b, w_b, bias_b, block_rows=8, block_vocab=128)
    )
    ref_b = jax.nn.log_softmax(x_b @ w_b + bias_b, axis=-1)
    assert out_b.shape == (b2s, s2, v2)
    assert jnp.allclose(out_b, ref_b, atol=1e-5, rtol=1e-5), "mismatch (padded case)"

    print("KERNEL_OK")
</pallas_src>

<mosaic_0001>
module attributes {stable_mosaic.version = 11 : i64} {
  func.func @_generator_kernel(%arg0: i32, %arg1: i32, %arg2: memref<16x32xf32, #tpu.memory_space<vmem>>, %arg3: memref<32x128xf32, #tpu.memory_space<vmem>>, %arg4: memref<1x128xf32, #tpu.memory_space<vmem>>, %arg5: memref<16x512xf32, #tpu.memory_space<vmem>>, %arg6: memref<16x1xf32, #tpu.memory_space<vmem>>, %arg7: memref<16x1xf32, #tpu.memory_space<vmem>>) attributes {dimension_semantics = [#tpu.dimension_semantics<parallel>, #tpu.dimension_semantics<arbitrary>], iteration_bounds = array<i64: 1, 4>, scalar_prefetch = 0 : i64, scratch_operands = 2 : i64, tpu.core_type = #tpu.core_type<tc>, window_params = [{transform_indices = @transform_0, window_bounds = array<i64: 16, 32>}, {transform_indices = @transform_1, window_bounds = array<i64: 32, 128>}, {transform_indices = @transform_2, window_bounds = array<i64: 1, 128>}, {transform_indices = @transform_3, window_bounds = array<i64: 16, 512>}]} {
    %c0_i32 = arith.constant 0 : i32
    %0 = arith.cmpi eq, %arg1, %c0_i32 : i32
    %1 = arith.extui %0 : i1 to i32
    %c0_i32_0 = arith.constant 0 : i32
    %2 = arith.cmpi ne, %1, %c0_i32_0 : i32
    scf.if %2 {
      %cst_18 = arith.constant 0xFF800000 : f32
      %32 = vector.broadcast %cst_18 : f32 to vector<16x1xf32>
      %c0_19 = arith.constant 0 : index
      %c0_20 = arith.constant 0 : index
      %33 = vector.load %arg6[%c0_19, %c0_20] : memref<16x1xf32, #tpu.memory_space<vmem>>, vector<16x1xf32>
      tpu.vector_store %arg6[%c0_19, %c0_20], %32 {strides = array<i32>} : memref<16x1xf32, #tpu.memory_space<vmem>>, vector<16x1xf32>,
      %cst_21 = arith.constant 0.000000e+00 : f32
      %34 = vector.broadcast %cst_21 : f32 to vector<16x1xf32>
      %c0_22 = arith.constant 0 : index
      %c0_23 = arith.constant 0 : index
      %35 = vector.load %arg7[%c0_22, %c0_23] : memref<16x1xf32, #tpu.memory_space<vmem>>, vector<16x1xf32>
      tpu.vector_store %arg7[%c0_22, %c0_23], %34 {strides = array<i32>} : memref<16x1xf32, #tpu.memory_space<vmem>>, vector<16x1xf32>,
    } else {
    }
    %c0 = arith.constant 0 : index
    %c0_1 = arith.constant 0 : index
    %3 = vector.load %arg2[%c0, %c0_1] : memref<16x32xf32, #tpu.memory_space<vmem>>, vector<16x32xf32>
    %c0_2 = arith.constant 0 : index
    %c0_3 = arith.constant 0 : index
    %4 = vector.load %arg3[%c0_2, %c0_3] : memref<32x128xf32, #tpu.memory_space<vmem>>, vector<32x128xf32>
    %cst = arith.constant dense<0.000000e+00> : vector<16x128xf32>
    %5 = tpu.matmul %3, %4, %cst {dimension_numbers = #tpu.dot_dimension_numbers<[1], [0], [0], [1], [0, 0, 1, 1], [], []>} : vector<16x32xf32>, vector<32x128xf32>, vector<16x128xf32> -> vector<16x128xf32>
    %c0_4 = arith.constant 0 : index
    %c0_5 = arith.constant 0 : index
    %6 = vector.load %arg4[%c0_4, %c0_5] : memref<1x128xf32, #tpu.memory_space<vmem>>, vector<1x128xf32>
    %7 = vector.broadcast %6 : vector<1x128xf32> to vector<16x128xf32>
    %8 = arith.addf %5, %7 : vector<16x128xf32>
    %c0_6 = arith.constant 0 : index
    %c0_7 = arith.constant 0 : index
    %9 = vector.load %arg6[%c0_6, %c0_7] : memref<16x1xf32, #tpu.memory_space<vmem>>, vector<16x1xf32>
    %cst_8 = arith.constant dense<0xFF800000> : vector<16xf32>
    %10 = vector.multi_reduction <maximumf>, %8, %cst_8 [1] : vector<16x128xf32> to vector<16xf32>
    %11 = vector.shape_cast %10 : vector<16xf32> to vector<16x1xf32>
    %12 = arith.maximumf %9, %11 : vector<16x1xf32>
    %13 = arith.subf %9, %12 : vector<16x1xf32>
    %14 = math.exp %13 : vector<16x1xf32>
    %c0_9 = arith.constant 0 : index
    %c0_10 = arith.constant 0 : index
    %15 = vector.load %arg7[%c0_9, %c0_10] : memref<16x1xf32, #tpu.memory_space<vmem>>, vector<16x1xf32>
    %16 = arith.mulf %14, %15 : vector<16x1xf32>
    %17 = vector.broadcast %12 : vector<16x1xf32> to vector<16x128xf32>
    %18 = arith.subf %8, %17 : vector<16x128xf32>
    %19 = math.exp %18 : vector<16x128xf32>
    %cst_11 = arith.constant dense<0.000000e+00> : vector<16xf32>
    %20 = vector.multi_reduction <add>, %19, %cst_11 [1] : vector<16x128xf32> to vector<16xf32>
    %21 = vector.shape_cast %20 : vector<16xf32> to vector<16x1xf32>
    %22 = arith.addf %16, %21 : vector<16x1xf32>
    %c0_12 = arith.constant 0 : index
    %c0_13 = arith.constant 0 : index
    %23 = vector.load %arg7[%c0_12, %c0_13] : memref<16x1xf32, #tpu.memory_space<vmem>>, vector<16x1xf32>
    tpu.vector_store %arg7[%c0_12, %c0_13], %22 {strides = array<i32>} : memref<16x1xf32, #tpu.memory_space<vmem>>, vector<16x1xf32>,
    %c0_14 = arith.constant 0 : index
    %c0_15 = arith.constant 0 : index
    %24 = vector.load %arg6[%c0_14, %c0_15] : memref<16x1xf32, #tpu.memory_space<vmem>>, vector<16x1xf32>
    tpu.vector_store %arg6[%c0_14, %c0_15], %12 {strides = array<i32>} : memref<16x1xf32, #tpu.memory_space<vmem>>, vector<16x1xf32>,
    %c128_i32 = arith.constant 128 : i32
    %25 = arith.muli %arg1, %c128_i32 : i32
    %26 = tpu.assume_multiple %25, 128 : i32
    %c0_16 = arith.constant 0 : index
    %27 = arith.index_cast %26 : i32 to index
    %28 = vector.load %arg5[%c0_16, %27] : memref<16x512xf32, #tpu.memory_space<vmem>>, vector<16x128xf32>
    tpu.vector_store %arg5[%c0_16, %27], %8 {strides = array<i32>} : memref<16x512xf32, #tpu.memory_space<vmem>>, vector<16x128xf32>,
    %c3_i32 = arith.constant 3 : i32
    %29 = arith.cmpi eq, %arg1, %c3_i32 : i32
    %30 = arith.extui %29 : i1 to i32
    %c0_i32_17 = arith.constant 0 : i32
    %31 = arith.cmpi ne, %30, %c0_i32_17 : i32
    scf.if %31 {
      %c0_18 = arith.constant 0 : index
      %c0_19 = arith.constant 0 : index
      %32 = vector.load %arg6[%c0_18, %c0_19] : memref<16x1xf32, #tpu.memory_space<vmem>>, vector<16x1xf32>
      %c0_20 = arith.constant 0 : index
      %c0_21 = arith.constant 0 : index
      %33 = vector.load %arg7[%c0_20, %c0_21] : memref<16x1xf32, #tpu.memory_space<vmem>>, vector<16x1xf32>
      %34 = math.log %33 : vector<16x1xf32>
      %35 = arith.addf %32, %34 : vector<16x1xf32>
      %c0_22 = arith.constant 0 : index
      %c0_23 = arith.constant 0 : index
      %36 = vector.load %arg5[%c0_22, %c0_23] : memref<16x512xf32, #tpu.memory_space<vmem>>, vector<16x512xf32>
      %37 = vector.broadcast %35 : vector<16x1xf32> to vector<16x512xf32>
      %38 = arith.subf %36, %37 : vector<16x512xf32>
      %c0_24 = arith.constant 0 : index
      %c0_25 = arith.constant 0 : index
      %39 = vector.load %arg5[%c0_24, %c0_25] : memref<16x512xf32, #tpu.memory_space<vmem>>, vector<16x512xf32>
      tpu.vector_store %arg5[%c0_24, %c0_25], %38 {strides = array<i32>} : memref<16x512xf32, #tpu.memory_space<vmem>>, vector<16x512xf32>,
    } else {
    }
    return
  }
  func.func @transform_0(%arg0: i32, %arg1: i32) -> (i32, i32) {
    %c0_i32 = arith.constant 0 : i32
    %c0_i32_0 = arith.constant 0 : i32
    return %arg0, %c0_i32 : i32, i32
  }
  func.func @transform_1(%arg0: i32, %arg1: i32) -> (i32, i32) {
    %c0_i32 = arith.constant 0 : i32
    %c0_i32_0 = arith.constant 0 : i32
    return %c0_i32, %arg1 : i32, i32
  }
  func.func @transform_2(%arg0: i32, %arg1: i32) -> (i32, i32) {
    %c0_i32 = arith.constant 0 : i32
    %c0_i32_0 = arith.constant 0 : i32
    return %c0_i32, %arg1 : i32, i32
  }
  func.func @transform_3(%arg0: i32, %arg1: i32) -> (i32, i32) {
    %c0_i32 = arith.constant 0 : i32
    %c0_i32_0 = arith.constant 0 : i32
    return %arg0, %c0_i32 : i32, i32
  }
}

</mosaic_0001>

<bundles_post_ra>
// kernel: generator_forward.1
= control target key start
LH: loop header
LB: loop body
LE: loop exit
PB: predicated region body
PF: predicated region fallthrough
CT: control target
= control target key end

     0   :  { %8 = vsyncpa [#allocation5], 0  ;;  %s1058_s0 = inlined_call_operand.hbm [shape: f32[16,32], index: 0, kind: input, shape index: {}]   ;;  %s1059_s1 = inlined_call_operand.hbm [shape: f32[32,512], index: 1, kind: input, shape index: {}]   ;;  %s1060_s2 = inlined_call_operand.vmem [shape: f32[1,512], index: 2, kind: input, shape index: {}]   ;;  %s1061_s3 = inlined_call_operand.hbm [shape: f32[16,512], index: 3, kind: output, shape index: {}]  }
   0x1   :  { %9 = vsyncpa [#allocation8], 0 }
   0x2   :  { %11 = vsyncpa [#allocation8 + $0x1], 0 }
   0x3   :  { %12 = vsyncpa [#allocation6], 0  ;;  %s853_s12 = smov 0   ;;  %s855_s13 = smov 0  }
   0x4   :  { %s857_s14 = smov 0   ;;  %s859_s15 = smov 0  }
   0x5   :  { %s861_s16 = smov 0   ;;  %s863_s17 = smov 0  }
   0x6 LB: > { %s535_s18 = sadd.s32 4294967295, %s819_s17   ;;  %p70_p0 = scmp.ne.s32.totalorder %s807_s14, %s803_s13  ;;  %s819_s17 = sphi %s863_s17, %s18_s17   ;;  %s815_s16 = sphi %s861_s16, %s1082_s16   ;;  %s811_s15 = sphi %s859_s15, %s1081_s15   ;;  %s807_s14 = sphi %s857_s14, %s1080_s14   ;;  %s803_s13 = sphi %s855_s13, %s1079_s13   ;;  %s799_s12 = sphi %s853_s12, %s1078_s12  }
   0x7   : > { %p71_p1 = scmp.eq.s32.totalorder %s819_s17, 0  ;;  %p76_p2 = scmp.ne.s32.totalorder %s803_s13, %s799_s12 }
   0x8   : > { %p888_p3 = scmp.eq.s32.totalorder %s535_s18, 0  ;;  %p536_p4 = scmp.ge.s32.totalorder %s819_s17, 1 }
   0x9   : > { %p72_p5 = por %p71_p1, %p70_p0  ;;  %p139_p6 = scmp.lt.s32.totalorder %s819_s17, 5 }
   0xa   : > { %s1067_s19 = scalar_select %p888_p3, 1, 0 }
   0xb   : > { %p896_p7 = por %p888_p3, %p76_p2  ;;  %p900_p8 = pnand %p536_p4, %p139_p6 }
   0xc   : > { %s821_s22 = smov [#allocation4]   ;;  %p599_p11 = scmp.lt.s32.totalorder %s819_s17, 4 }
   0xd   : > { %s1068_s20 = scalar_select %p896_p7, 1, 0 }
   0xe   : > { %s1069_s21 = scalar_select %p900_p8, 1, 0 }
   0xf   : > { %s154_s23 = sshll.u32 %s821_s22, 4  ;;  %p590_p9 = pneg %p900_p8  ;;  %s155_s23 = int_to_ptr.vmem [resolvable:$true] %s154_s23 }
  0x10   : > { %s63_s25 = sadd.s32 1, %s807_s14  ;;  %p914_p12 = pnand %p599_p11, %p72_p5 }
  0x11   : > { %p908_p10 = pnand %p590_p9, %p888_p3  ;;  %s677_s29 = scalar_lea.hbm %s1058_s0, 256 }
  0x12   : > { %s1071_s26 = scalar_select %p914_p12, 1, 0 }
  0x13   : > { %p678_p13 = scmp.ne.s32.totalorder %s1058_s0, %s677_s29  ;;  %p679_p0 = pneg %p908_p10 }
  0x14   : > { %p684_p4 = scmp.lt.u32.totalorder %s677_s29, %s1058_s0 }
  0x15   : > { %p680_p1 = pnand %p679_p0, %p678_p13 }
  0x17   : > { %p681_p2 = pneg %p680_p1 }
  0x19   : > { %p686_p5 = pnand %p684_p4, %p681_p2 }
  0x1b   : > { %689 = shalt.err (!%p686_p5)
}
  0x1c   : > { %s690_s7 = scalar_lea.vmem %s155_s23, 256  ;;  %p698_p7 = scmp.lt.s32.totalorder %s155_s23, %s155_s23 }
  0x1d   : > { %p691_p6 = scmp.ne.s32.totalorder %s155_s23, %s690_s7  ;;  %p699_p3 = scmp.lt.s32.totalorder %s690_s7, %s690_s7 }
  0x1f   : > { %p693_p9 = pnand %p691_p6, %p679_p0  ;;  %p700_p8 = por %p699_p3, %p698_p7 }
  0x21   : > { %p694_p11 = pneg %p693_p9 }
  0x23   : > { %p701_p12 = pnand %p700_p8, %p694_p11 }
  0x25   : > { %704 = shalt.err (!%p701_p12)
}
  0x26   : > { %s822_s8 = smov 128   ;;  %s823_s9 = smov 8  }
  0x27   : > { %593 = dma.hbm_to_vmem [thread:$0]  (!%p908_p10), %s1058_s0, 256, %s155_s23, [#allocation5], %s822_s8, %s822_s8, %s823_s9  }
  0x28   : > { %s27_s12 = sadd.s32 1, %s815_s16  ;;  %s168_s22 = sand.u32 1, %s807_s14  }
  0x29   : > { %p28_p3 = scmp.ge.s32.totalorder %s27_s12, 4  ;;  %s539_s27 = sshll.u32 %s168_s22, 5 }
  0x2a   : > { %s540_s28 = sshll.u32 %s815_s16, 7  ;;  %s172_s23 = scalar_lea.vmem [#allocation7], %s539_s27 }
  0x2b   : > { %s1084_s12 = smov (%p28_p3, %s27_s12), 0  ;;  %s945_s24 = scalar_lea.hbm %s1059_s1, %s540_s28 }
  0x2c   : > { %s60_s4 = ssub.s32 %s815_s16, %s1084_s12  ;;  %s178_s5 = sshll.u32 %s172_s23, 4  ;;  %s949_s5 = int_to_ptr.vmem [resolvable:$true] %s178_s5 }
  0x2d   : > { %p61_p7 = scmp.eq.s32.totalorder %s60_s4, 0  ;;  %s956_s7 = scalar_lea.sflag [#allocation8], %s168_s22 }
  0x2e   : > { %s705_s10 = scalar_lea.hbm %s945_s24, 512  ;;  %p1072_p10 = scmp.ne.s32.totalorder %s1071_s26, 0 }
  0x2f   : > { %s954_s6 = scalar_select %p61_p7, %s807_s14, %s63_s25  }
  0x30   : > { %p706_p8 = scmp.ne.s32.totalorder %s945_s24, %s705_s10  ;;  %p707_p12 = pneg %p1072_p10 }
  0x31   : > { %s710_s27 = scalar_lea.hbm %s1059_s1, 2048  ;;  %p711_p1 = scmp.lt.u32.totalorder %s945_s24, %s1059_s1 }
  0x32   : > { %p708_p13 = pnand %p707_p12, %p706_p8  ;;  %p712_p2 = scmp.lt.u32.totalorder %s710_s27, %s705_s10 }
  0x33   : > { %p714_p5 = scmp.lt.u32.totalorder %s705_s10, %s945_s24 }
  0x34   : > { %p709_p0 = pneg %p708_p13  ;;  %p713_p4 = por %p712_p2, %p711_p1 }
  0x36   : > { %p715_p6 = por %p714_p5, %p713_p4 }
  0x38   : > { %p716_p9 = pnand %p715_p6, %p709_p0 }
  0x3a   : > { %719 = shalt.err (!%p716_p9)
}
  0x3b   : > { %s720_s25 = scalar_lea.vmem %s949_s5, 512  ;;  %s824_s22 = smov [#allocation7]  }
  0x3c   : > { %p721_p11 = scmp.ne.s32.totalorder %s949_s5, %s720_s25  ;;  %s725_s4 = sshll.u32 %s824_s22, 4  ;;  %s726_s4 = int_to_ptr.vmem [resolvable:$false] %s725_s4 }
  0x3d   : > { %s727_s23 = scalar_lea.vmem %s726_s4, 1024  ;;  %p728_p8 = scmp.lt.s32.totalorder %s949_s5, %s726_s4 }
  0x3e   : > { %p723_p3 = pnand %p721_p11, %p707_p12  ;;  %p729_p13 = scmp.lt.s32.totalorder %s727_s23, %s720_s25 }
  0x40   : > { %p724_p7 = pneg %p723_p3  ;;  %p730_p1 = por %p729_p13, %p728_p8 }
  0x42   : > { %p731_p2 = pnand %p730_p1, %p724_p7 }
  0x44   : > { %734 = shalt.err (!%p731_p2)
}
  0x45   : > { %s825_s10 = smov 512   ;;  %p1073_p12 = scmp.ne.s32.totalorder %s1069_s21, 0 }
  0x46   : > { %597 = dma.hbm_to_vmem [thread:$0]  (!%p1072_p10), %s945_s24, 512, %s949_s5, %s956_s7, %s825_s10, %s822_s8, %s823_s9  }
  0x47   : > { %196 = sbr.rel (%p1073_p12) target bundleno = 935 (0x3a7), region = 32  ;;  %p1074_p0 = scmp.ne.s32.totalorder (!%p1073_p12), %s1067_s19, 0 }
  0x4e   : > { %786 = dma.done.wait (%p1074_p0), [#allocation5], 256  }
  0x4f   : > { %788 = vsyncadd (%p1074_p0), [#allocation5], 4294967040  ;;  %s202_s11 = sand.u32 1, %s803_s13   ;;  %p1075_p4 = scmp.ne.s32.totalorder %s1068_s20, 0 }
  0x50   : > { %s543_s28 = sshll.u32 %s202_s11, 5  ;;  %s203_s26 = scalar_lea.sflag [#allocation8], %s202_s11 }
  0x51   : > { %s206_s27 = scalar_lea.vmem [#allocation7], %s543_s28 }
  0x52   : > { %790 = dma.done.wait (%p1075_p4), %s203_s26, 512  }
  0x53   : > { %792 = vsyncadd (%p1075_p4), %s203_s26, 4294966784  ;;  %p228_p10 = scmp.lt.s32.totalorder %s811_s15, 3  ;;  %p544_p5 = scmp.ne.s32.totalorder %s811_s15, 0 }
  0x54   : > { %vm236_vm0 = vcmask (!%p544_p5), 7168   ;;  %v826_v0 = vmov (!%p544_p5), -inf   ;;  %v827_v1 = vmov (!%p544_p5), 0.0  }
  0x55   : > { %s999_s21 = scalar_select %p228_p10, %s811_s15, 3 }
  0x56   : > { %235 = sbr.rel (%p544_p5) target bundleno = 93 (0x5d), region = 44  ;;  %237 = vst.msk [vmem:[#allocation2] sm:$0xff] (!%p544_p5), %vm236_vm0, %v826_v0  ;;  %238 = vst.msk [vmem:[#allocation2 + $0x8] sm:$0xff] (!%p544_p5), %vm236_vm0, %v826_v0 }
  0x57   : > { %s230_s9 = scalar_lea.vmem %s1060_s2, %s999_s21  ;;  %239 = vst.msk [vmem:[#allocation3] sm:$0xff] (!%p544_p5), %vm236_vm0, %v827_v1  ;;  %240 = vst.msk [vmem:[#allocation3 + $0x8] sm:$0xff] (!%p544_p5), %vm236_vm0, %v827_v1 }
  0x5d PF: > { %v243_v2 = vld [vmem:[%s206_s27] sm:$0xff]  ;;  %v244_v3 = vld [vmem:[%s206_s27 + $0x8] sm:$0xff]  ;;  %v245_v4 = vld [vmem:[%s206_s27 + $0x10] sm:$0xff]  ;;  %vm254_vm1 = vcmask 261120   ;;  %s548_s20 = sshll.u32 %s811_s15, 7  ;;  %v828_v15 = vmov 0  }
  0x5e   : > { %v572_v5 = vpack.c.bf16 %v244_v3, %v243_v2  ;;  %v246_v6 = vld [vmem:[%s206_s27 + $0x18] sm:$0xff]  ;;  %v241_v7 = vld [vmem:[#allocation4] sm:$0xff]  ;;  %s382_s24 = sshra.s32 %s548_s20, 7  ;;  %662 = vset.pattern.permute.xlu1 %v828_v15  ;;  %663 = vset.pattern.permute.xlu0 %v828_v15  ;;  %vm376_vm2 = vcmask 7168   ;;  %v350_v35 = vld [vmem:[#allocation3] sm:$0xff]  ;;  %p550_p6 = scmp.ne.s32.totalorder %s811_s15, 3 }
  0x5f   : > { %v576_v8 = vpack.c.bf16 %v246_v6, %v245_v4  ;;  %569 = vmatprep.mubr.msk.f32.mxu0 %vm254_vm1, %v241_v7  ;;  %v242_v9 = vld [vmem:[#allocation4 + $0x8] sm:$0xff]  ;;  %s549_s5 = sshll.u32 %s382_s24, 3  ;;  %v545_v10 = vld [vmem:[%s230_s9] ss:$0 sm:$0xff]  ;;  %v351_v39 = vld [vmem:[#allocation3 + $0x8] sm:$0xff]  ;;  %v829_v45 = vmov (!%p550_p6), 0  }
  0x60   : > { %573 = vmatprep.subr.bf16.mxu0 %v572_v5  ;;  %s385_s7 = scalar_lea.vmem [#allocation9], %s549_s5  ;;  %v336_v16 = vld [vmem:[#allocation2] sm:$0xff]  ;;  %v337_v19 = vld [vmem:[#allocation2 + $0x8] sm:$0xff]  ;;  %672 = vset.pattern.permute.xlu0 (!%p550_p6), %v829_v45 }
  0x61   : > { %575 = vmatpush3.bf16.msra.mxu0 %v572_v5 }
  0x62   : > { %577 = vmatprep.subr.bf16.mxu0 %v576_v8 }
  0x65   : > { %579 = vmatpush3.bf16.msra.mxu0 %v576_v8 }
  0x68   : > { %570 = vmatmul.mubr.msk.f32.vlgmr.msra.gmra.mrb[0].mxu0 %vm254_vm1, %v242_v9 }
 0x13b   : > { %v571_v11 = vpop.f32.mrb[0].mxu0 }
 0x13c   : > { %v333_v12 = vadd.f32 %v571_v11, %v545_v10  ;;  %v327_v13 = vpop.f32.mrb[1].mxu0 }
 0x13d   : > { %v328_v14 = vadd.f32 %v545_v10, %v327_v13 }
 0x13e   : > { %387 = vst [vmem:[%s385_s7 + $0x20] sm:$0xff] %v333_v12 }
 0x13f   : > { %386 = vst [vmem:[%s385_s7] sm:$0xff] %v328_v14  ;;  %338 = vmax.xlane.f32.xlu0 %v328_v14 }
 0x143   : > { %340 = vmax.xlane.f32.xlu0 %v333_v12 }
 0x146   : > { %v402_v55 = vld [vmem:[#allocation9] sm:$0xff] (!%p550_p6)  ;;  %v403_v56 = vld [vmem:[#allocation9 + $0x8] sm:$0xff] (!%p550_p6)  ;;  %v404_v57 = vld [vmem:[#allocation9 + $0x10] sm:$0xff] (!%p550_p6) }
 0x147   : > { %v405_v58 = vld [vmem:[#allocation9 + $0x18] sm:$0xff] (!%p550_p6)  ;;  %v406_v0 = vld [vmem:[#allocation9 + $0x20] sm:$0xff] (!%p550_p6)  ;;  %v407_v1 = vld [vmem:[#allocation9 + $0x28] sm:$0xff] (!%p550_p6) }
 0x148   : > { %v408_v2 = vld [vmem:[#allocation9 + $0x30] sm:$0xff] (!%p550_p6)  ;;  %v409_v3 = vld [vmem:[#allocation9 + $0x38] sm:$0xff] (!%p550_p6) }
 0x1cc   : > { %v339_v17 = vpop.xlane.xlu0 %338 }
 0x1cd   : > { %v342_v18 = vmax.f32 %v336_v16, %v339_v17 }
 0x1cf   : > { %v344_v20 = vsub.f32 %v336_v16, %v342_v18  ;;  %379 = vst.msk [vmem:[#allocation2] sm:$0xff] %vm376_vm2, %v342_v18  ;;  %356 = vperm.xlu1 %662, %v342_v18  }
 0x1d0   : > { %v341_v21 = vpop.xlane.xlu0 %340 }
 0x1d1   : > { %v343_v22 = vmax.f32 %v337_v19, %v341_v21  ;;  %v346_v32 = vmul.f32 1.442695, %v344_v20 }
 0x1d3   : > { %v345_v23 = vsub.f32 %v337_v19, %v343_v22  ;;  %380 = vst.msk [vmem:[#allocation2 + $0x8] sm:$0xff] %vm376_vm2, %v343_v22  ;;  %361 = vperm.xlu1 %662, %v343_v22  }
 0x1d5   : > { %v348_v33 = vmul.f32 1.442695, %v345_v23 }
 0x1d6   : > { %v392_v48 = vld [vmem:[#allocation2] sm:$0xff] (!%p550_p6) }
 0x1da   : > { %v393_v51 = vld [vmem:[#allocation2 + $0x8] sm:$0xff] (!%p550_p6) }
 0x24e   : > { %v357_v24 = vpop.permute.xlu1 %356 }
 0x24f   : > { %v364_v25 = vsub.f32 %v328_v14, %v357_v24 }
 0x251   : > { %v366_v26 = vmul.f32 1.442695, %v364_v25 }
 0x252   : > { %v362_v27 = vpop.permute.xlu1 %361 }
 0x253   : > { %664 = vpow2.f32 %v366_v26  ;;  %v365_v28 = vsub.f32 %v333_v12, %v362_v27 }
 0x255   : > { %v368_v29 = vmul.f32 1.442695, %v365_v28 }
 0x257   : > { %666 = vpow2.f32 %v368_v29 }
 0x258   : > { %668 = vpow2.f32 %v346_v32 }
 0x259   : > { %670 = vpow2.f32 %v348_v33 }
 0x25d   : > { %v665_v30 = vpop.eup %664 }
 0x25e   : > { %370 = vadd.xlane.f32.xlu0 %v665_v30 }
 0x261   : > { %v667_v31 = vpop.eup %666 }
 0x262   : > { %372 = vadd.xlane.f32.xlu1 %v667_v31  ;;  %v669_v34 = vpop.eup %668 }
 0x263   : > { %v352_v36 = vmul.f32 %v669_v34, %v350_v35  ;;  %v671_v37 = vpop.eup %670 }
 0x264   : > { %v353_v41 = vmul.f32 %v671_v37, %v351_v39 }
 0x2eb   : > { %v371_v38 = vpop.xlane.xlu0 %370 }
 0x2ec   : > { %v374_v40 = vadd.f32 %v371_v38, %v352_v36  ;;  %391 = sbr.rel (%p550_p6) target bundleno = 909 (0x38d), region = 48 }
 0x2ee   : > { %377 = vst.msk [vmem:[#allocation3] sm:$0xff] %vm376_vm2, %v374_v40 }
 0x2ef   : > { %v373_v42 = vpop.xlane.xlu1 %372 }
 0x2f0   : > { %v375_v43 = vadd.f32 %v373_v42, %v353_v41 }
 0x2f2   : > { %378 = vst.msk [vmem:[#allocation3 + $0x8] sm:$0xff] %vm376_vm2, %v375_v43 }
 0x2f5   : > { %v394_v44 = vld [vmem:[#allocation3] sm:$0xff] }
 0x2f6   : > { %673 = vlog2.f32 %v394_v44 }
 0x2f9   : > { %v395_v46 = vld [vmem:[#allocation3 + $0x8] sm:$0xff] }
 0x2fa   : > { %675 = vlog2.f32 %v395_v46 }
 0x300   : > { %v674_v47 = vpop.eup %673 }
 0x301   : > { %v397_v50 = vmul.f32 0.6931472, %v674_v47 }
 0x303   : > { %v400_v53 = vadd.f32 %v397_v50, %v392_v48 }
 0x304   : > { %v676_v49 = vpop.eup %675 }
 0x305   : > { %v399_v52 = vmul.f32 0.6931472, %v676_v49  ;;  %412 = vperm.xlu0 %672, %v400_v53  }
 0x307   : > { %v401_v54 = vadd.f32 %v399_v52, %v393_v51 }
 0x309   : > { %417 = vperm.xlu0 %672, %v401_v54  }
 0x384   : > { %v413_v59 = vpop.permute.xlu0 %412 }
 0x385   : > { %v420_v60 = vsub.f32 %v402_v55, %v413_v59  ;;  %v421_v61 = vsub.f32 %v403_v56, %v413_v59  ;;  %v422_v62 = vsub.f32 %v404_v57, %v413_v59  ;;  %v423_v63 = vsub.f32 %v405_v58, %v413_v59 }
 0x387   : > { %428 = vst [vmem:[#allocation9] sm:$0xff] %v420_v60  ;;  %429 = vst [vmem:[#allocation9 + $0x8] sm:$0xff] %v421_v61 }
 0x388   : > { %430 = vst [vmem:[#allocation9 + $0x10] sm:$0xff] %v422_v62  ;;  %431 = vst [vmem:[#allocation9 + $0x18] sm:$0xff] %v423_v63  ;;  %v418_v4 = vpop.permute.xlu0 %417 }
 0x389   : > { %v424_v5 = vsub.f32 %v406_v0, %v418_v4  ;;  %v425_v6 = vsub.f32 %v407_v1, %v418_v4  ;;  %v426_v7 = vsub.f32 %v408_v2, %v418_v4  ;;  %v427_v8 = vsub.f32 %v409_v3, %v418_v4 }
 0x38b   : > { %432 = vst [vmem:[#allocation9 + $0x20] sm:$0xff] %v424_v5  ;;  %433 = vst [vmem:[#allocation9 + $0x28] sm:$0xff] %v425_v6 }
 0x38c   : > { %434 = vst [vmem:[#allocation9 + $0x30] sm:$0xff] %v426_v7  ;;  %435 = vst [vmem:[#allocation9 + $0x38] sm:$0xff] %v427_v8 }
 0x38d PF: > { %p1014_p9 = scmp.eq.s32.totalorder %s535_s18, 3  ;;  %s830_s29 = smov [#allocation9]  }
 0x38e   : > { %s446_s30 = sshll.u32 %s830_s29, 4  ;;  %s447_s30 = int_to_ptr.vmem [resolvable:$true] %s446_s30 }
 0x38f   : > { %s735_s25 = scalar_lea.vmem %s447_s30, 1024  ;;  %p742_p8 = scmp.lt.s32.totalorder %s447_s30, %s447_s30 }
 0x390   : > { %p736_p11 = scmp.ne.s32.totalorder %s447_s30, %s735_s25  ;;  %p743_p13 = scmp.lt.s32.totalorder %s735_s25, %s735_s25 }
 0x392   : > { %p737_p3 = pnand %p736_p11, %p1014_p9  ;;  %p744_p1 = por %p743_p13, %p742_p8 }
 0x394   : > { %p738_p7 = pneg %p737_p3 }
 0x396   : > { %p745_p2 = pnand %p744_p1, %p738_p7 }
 0x398   : > { %748 = shalt.err (!%p745_p2)
}
 0x399   : > { %s749_s18 = scalar_lea.hbm %s1061_s3, 1024 }
 0x39a   : > { %p750_p12 = scmp.ne.s32.totalorder %s1061_s3, %s749_s18  ;;  %p755_p10 = scmp.lt.u32.totalorder %s749_s18, %s1061_s3 }
 0x39c   : > { %p751_p0 = pnand %p750_p12, %p1014_p9 }
 0x39e   : > { %p752_p4 = pneg %p751_p0 }
 0x3a0   : > { %p757_p5 = pnand %p755_p10, %p752_p4 }
 0x3a2   : > { %760 = shalt.err (!%p757_p5)
}
 0x3a3   : > { %s831_s26 = smov 512   ;;  %s832_s27 = smov 32  }
 0x3a4   : > { %587 = dma.vmem_to_hbm [thread:$0]  (%p1014_p9), %s447_s30, 1024, %s1061_s3, [#allocation6], %s831_s26, %s831_s26, %s832_s27  }
 0x3a5   : > { %794 = dma.done.wait (%p1014_p9), [#allocation6], 1024  }
 0x3a6   : > { %796 = vsyncadd (%p1014_p9), [#allocation6], 4294966272 }
 0x3a7 PF: > { %s18_s17 = sadd.s32 1, %s819_s17   ;;  %s1077_s19 = smov %s1084_s12 }
 0x3a8   : > { %p15_p6 = scmp.ge.s32.totalorder %s18_s17, 6   ;;  %s1078_s12 = smov %s803_s13 }
 0x3a9   : > { %s1079_s13 = smov %s807_s14  ;;  %s1080_s14 = smov %s954_s6 }
 0x3aa   : > { %s1081_s15 = smov %s815_s16  ;;  %s1082_s16 = smov %s1077_s19 }
 0x3ab   :  { %17 = sbr.rel (!%p15_p6) target bundleno = 6 (0x6), region = 88 }
 0x3b2   :  { %462 = vsyncpa [#allocation5], 1 }
 0x3b3   :  { %464 = vsyncpa [#allocation5 + $0x1], 1 }
 0x3b4   :  { %465 = vsyncpa [#allocation8], 1 }
 0x3b5   :  { %467 = vsyncpa [#allocation8 + $0x1], 1 }
 0x3b6   :  { %468 = vsyncpa [#allocation6], 1 }
 0x3b7   :  { %470 = vsyncpa [#allocation6 + $0x1], 1 }

</bundles_post_ra>
